<compile_context>
chip_gen: v7x
topology: tpu7x:2x2x1
jax: 0.10.0
libtpu: 0.0.40
codegen_flags: <defaults>
</compile_context>

<pallas_src>
import functools
import math

import jax
import jax.numpy as jnp
from jax.experimental import pallas as pl
from jax.experimental.pallas import tpu as pltpu


def _downsample_kernel(y_ref, yh_ref, wa_ref, wb_ref, wc_ref, wd_ref, b_ref, o_ref):
    # y_ref : (1, TH, Wo+1, 4C)  rows [r*TH, r*TH+TH) of the space-to-depth input
    # yh_ref: (1, 1,  Wo+1, 4C)  halo row r*TH+TH (needed only by the kh=2 taps)
    # wa/wb/wc/wd: (4C,Co) (2C,Co) (2C,Co) (C,Co)  folded weight slabs
    # b_ref : (1, Co) f32 bias
    # o_ref : (1, TH, Wo, Co)
    _, TH, Wo, Co = o_ref.shape
    C4 = y_ref.shape[-1]
    C = C4 // 4

    ym = y_ref[0]                                    # (TH, Wo+1, 4C)
    yh = yh_ref[0]                                   # (1,  Wo+1, 4C)

    # Rows shifted down by one (plane rows 1..TH); only the (ee, eo) channel
    # slice [C:3C) is used by the kh=2 taps.
    if TH > 1:
        ysh = jnp.concatenate([ym[1:, :, C:3 * C], yh[:, :, C:3 * C]], axis=0)
    else:
        ysh = yh[:, :, C:3 * C]                      # (TH, Wo+1, 2C)

    rows = TH * Wo
    xa = ym[:, :Wo, :].reshape(rows, 4 * C)          # taps (0,0),(0,1),(1,0),(1,1)
    xb = ym[:, 1:, :2 * C].reshape(rows, 2 * C)      # taps (0,2),(1,2)
    xc = ysh[:, :Wo, :].reshape(rows, 2 * C)         # taps (2,0),(2,1)
    xd = ysh[:, 1:, :C].reshape(rows, C)             # tap  (2,2)

    # f32 accumulator initialised with the bias; MXU fed with native dtype.
    acc = jnp.broadcast_to(b_ref[...], (rows, Co)).astype(jnp.float32)
    acc = acc + jnp.dot(xa, wa_ref[...], preferred_element_type=jnp.float32)
    acc = acc + jnp.dot(xb, wb_ref[...], preferred_element_type=jnp.float32)
    acc = acc + jnp.dot(xc, wc_ref[...], preferred_element_type=jnp.float32)
    acc = acc + jnp.dot(xd, wd_ref[...], preferred_element_type=jnp.float32)

    o_ref[0] = acc.reshape(TH, Wo, Co).astype(o_ref.dtype)


def _pick_row_tile(Ho, Wp, c4, elem_bytes, budget_bytes=4 << 20):
    """Largest divisor of Ho whose main input block stays under the VMEM budget."""
    best = 1
    for th in range(1, Ho + 1):
        if Ho % th == 0 and th * Wp * c4 * elem_bytes <= budget_bytes:
            best = th
    return best


@functools.partial(jax.jit, static_argnames=("row_tile",))
def downsample(x, weight, bias, *, row_tile=None):
    """Conv2d(dim, dim, kernel=3, stride=2, padding=1); NCHW in / NCHW out."""
    B, C, H, W = x.shape
    Cout = weight.shape[0]
    assert weight.shape == (Cout, C, 3, 3)
    assert H % 2 == 0 and W % 2 == 0, "even spatial dims assumed (as in SR3 UNet)"
    Ho, Wo = H // 2, W // 2
    Hp, Wp = Ho + 1, Wo + 1
    C4 = 4 * C

    # ---- layout prep: one fused pass NCHW -> padded space-to-depth NHWC (parity order oe,ee,eo,oo)
    x_nhwc = jnp.transpose(x, (0, 2, 3, 1))
    xp = jnp.pad(x_nhwc, ((0, 0), (1, 1), (1, 1), (0, 0)))       # (B, H+2, W+2, C)
    y6 = xp.reshape(B, Hp, 2, Wp, 2, C)                          # [b, i, rp, j, cp, c]
    y = jnp.concatenate(
        [y6[:, :, 1, :, 0, :],      # oe = x_pad[2i+1, 2j  ]
         y6[:, :, 0, :, 0, :],      # ee = x_pad[2i,   2j  ]
         y6[:, :, 0, :, 1, :],      # eo = x_pad[2i,   2j+1]
         y6[:, :, 1, :, 1, :]],     # oo = x_pad[2i+1, 2j+1]
        axis=-1)                                                  # (B, Hp, Wp, 4C)

    # ---- fold the 3x3 weights into 4 contiguous-K slabs (native dtype for the MXU)
    wt = jnp.transpose(weight, (2, 3, 1, 0)).astype(x.dtype)      # (3, 3, Cin, Cout)
    w_a = jnp.concatenate([wt[1, 0], wt[0, 0], wt[0, 1], wt[1, 1]], axis=0)  # (4C, Cout)
    w_b = jnp.concatenate([wt[1, 2], wt[0, 2]], axis=0)                      # (2C, Cout)
    w_c = jnp.concatenate([wt[2, 0], wt[2, 1]], axis=0)                      # (2C, Cout)
    w_d = wt[2, 2]                                                           # (C,  Cout)
    b2 = bias.reshape(1, Cout).astype(jnp.float32)

    # ---- spatial row tiling: bounded VMEM (v7x 64 MiB), many parallel grid steps
    if row_tile is None:
        row_tile = _pick_row_tile(Ho, Wp, C4, jnp.dtype(x.dtype).itemsize)
    TH = row_tile
    assert Ho % TH == 0
    grid = (B, Ho // TH)

    out_nhwc = pl.pallas_call(
        _downsample_kernel,
        out_shape=jax.ShapeDtypeStruct((B, Ho, Wo, Cout), x.dtype),
        grid=grid,
        in_specs=[
            pl.BlockSpec((1, TH, Wp, C4), lambda b, r: (b, r, 0, 0)),
            pl.BlockSpec((1, 1, Wp, C4), lambda b, r: (b, (r + 1) * TH, 0, 0)),
            pl.BlockSpec((4 * C, Cout), lambda b, r: (0, 0)),
            pl.BlockSpec((2 * C, Cout), lambda b, r: (0, 0)),
            pl.BlockSpec((2 * C, Cout), lambda b, r: (0, 0)),
            pl.BlockSpec((C, Cout), lambda b, r: (0, 0)),
            pl.BlockSpec((1, Cout), lambda b, r: (0, 0)),
        ],
        out_specs=pl.BlockSpec((1, TH, Wo, Cout), lambda b, r: (b, r, 0, 0)),
        compiler_params=pltpu.CompilerParams(
            dimension_semantics=("parallel", "parallel"),
            vmem_limit_bytes=48 * 1024 * 1024),
    )(y, y, w_a, w_b, w_c, w_d, b2)

    return jnp.transpose(out_nhwc, (0, 3, 1, 2))                  # back to NCHW


if __name__ == "__main__":
    key = jax.random.PRNGKey(0)
    k_w, k_b, k_x = jax.random.split(key, 3)

    dim = 4
    B, H, W = 2, 16, 16

    # Deterministic init mimicking nn.Conv2d defaults (uniform(-1/sqrt(fan_in), ...)).
    fan_in = dim * 3 * 3
    bound = 1.0 / math.sqrt(fan_in)
    weight = jax.random.uniform(k_w, (dim, dim, 3, 3), jnp.float32, -bound, bound)
    bias = jax.random.uniform(k_b, (dim,), jnp.float32, -bound, bound)
    x = jax.random.normal(k_x, (B, dim, H, W), jnp.float32)

    out = downsample(x, weight, bias)
    out = jax.block_until_ready(out)

    # Reference check against XLA's conv.
    ref = jax.lax.conv_general_dilated(
        x, weight, window_strides=(2, 2), padding=((1, 1), (1, 1)),
        dimension_numbers=("NCHW", "OIHW", "NCHW"))
    ref = ref + bias.reshape(1, -1, 1, 1)

    assert out.shape == (B, dim, H // 2, W // 2), out.shape
    err = float(jnp.max(jnp.abs(out - ref)))
    assert jnp.allclose(out, ref, atol=1e-5, rtol=1e-5), err
    print("KERNEL_OK")
</pallas_src>

<mosaic_0001>
module attributes {stable_mosaic.version = 11 : i64} {
  func.func @_downsample_kernel(%arg0: i32, %arg1: i32, %arg2: memref<1x8x9x16xf32, #tpu.memory_space<vmem>>, %arg3: memref<1x1x9x16xf32, #tpu.memory_space<vmem>>, %arg4: memref<16x4xf32, #tpu.memory_space<vmem>>, %arg5: memref<8x4xf32, #tpu.memory_space<vmem>>, %arg6: memref<8x4xf32, #tpu.memory_space<vmem>>, %arg7: memref<4x4xf32, #tpu.memory_space<vmem>>, %arg8: memref<1x4xf32, #tpu.memory_space<vmem>>, %arg9: memref<1x8x8x4xf32, #tpu.memory_space<vmem>>) attributes {dimension_semantics = [#tpu.dimension_semantics<parallel>, #tpu.dimension_semantics<parallel>], iteration_bounds = array<i64: 2, 1>, scalar_prefetch = 0 : i64, scratch_operands = 0 : i64, tpu.core_type = #tpu.core_type<tc>, window_params = [{transform_indices = @transform_0, window_bounds = array<i64: 1, 8, 9, 16>}, {transform_indices = @transform_1, window_bounds = array<i64: 1, 1, 9, 16>}, {pipeline_mode = #tpu.pipeline_mode<synchronous>, transform_indices = @transform_2, window_bounds = array<i64: 16, 4>}, {pipeline_mode = #tpu.pipeline_mode<synchronous>, transform_indices = @transform_3, window_bounds = array<i64: 8, 4>}, {pipeline_mode = #tpu.pipeline_mode<synchronous>, transform_indices = @transform_4, window_bounds = array<i64: 8, 4>}, {pipeline_mode = #tpu.pipeline_mode<synchronous>, transform_indices = @transform_5, window_bounds = array<i64: 4, 4>}, {pipeline_mode = #tpu.pipeline_mode<synchronous>, transform_indices = @transform_6, window_bounds = array<i64: 1, 4>}, {transform_indices = @transform_7, window_bounds = array<i64: 1, 8, 8, 4>}]} {
    %c0 = arith.constant 0 : index
    %c0_0 = arith.constant 0 : index
    %c0_1 = arith.constant 0 : index
    %c0_2 = arith.constant 0 : index
    %0 = vector.load %arg2[%c0, %c0_0, %c0_1, %c0_2] : memref<1x8x9x16xf32, #tpu.memory_space<vmem>>, vector<1x8x9x16xf32>
    %1 = vector.shape_cast %0 : vector<1x8x9x16xf32> to vector<8x9x16xf32>
    %c0_3 = arith.constant 0 : index
    %c0_4 = arith.constant 0 : index
    %c0_5 = arith.constant 0 : index
    %c0_6 = arith.constant 0 : index
    %2 = vector.load %arg3[%c0_3, %c0_4, %c0_5, %c0_6] : memref<1x1x9x16xf32, #tpu.memory_space<vmem>>, vector<1x1x9x16xf32>
    %3 = vector.shape_cast %2 : vector<1x1x9x16xf32> to vector<1x9x16xf32>
    %4 = vector.extract_strided_slice %1 {offsets = [1, 0, 4], sizes = [7, 9, 8], strides = [1, 1, 1]} : vector<8x9x16xf32> to vector<7x9x8xf32>
    %5 = vector.extract_strided_slice %3 {offsets = [0, 0, 4], sizes = [1, 9, 8], strides = [1, 1, 1]} : vector<1x9x16xf32> to vector<1x9x8xf32>
    %6 = tpu.concatenate %4, %5 in 0 : vector<7x9x8xf32>, vector<1x9x8xf32> -> vector<8x9x8xf32>
    %7 = vector.extract_strided_slice %1 {offsets = [0, 0, 0], sizes = [8, 8, 16], strides = [1, 1, 1]} : vector<8x9x16xf32> to vector<8x8x16xf32>
    %8 = vector.shape_cast %7 : vector<8x8x16xf32> to vector<64x16xf32>
    %9 = vector.extract_strided_slice %1 {offsets = [0, 1, 0], sizes = [8, 8, 8], strides = [1, 1, 1]} : vector<8x9x16xf32> to vector<8x8x8xf32>
    %10 = vector.shape_cast %9 : vector<8x8x8xf32> to vector<64x8xf32>
    %11 = vector.extract_strided_slice %6 {offsets = [0, 0, 0], sizes = [8, 8, 8], strides = [1, 1, 1]} : vector<8x9x8xf32> to vector<8x8x8xf32>
    %12 = vector.shape_cast %11 : vector<8x8x8xf32> to vector<64x8xf32>
    %13 = vector.extract_strided_slice %6 {offsets = [0, 1, 0], sizes = [8, 8, 4], strides = [1, 1, 1]} : vector<8x9x8xf32> to vector<8x8x4xf32>
    %14 = vector.shape_cast %13 : vector<8x8x4xf32> to vector<64x4xf32>
    %c0_7 = arith.constant 0 : index
    %c0_8 = arith.constant 0 : index
    %15 = vector.load %arg8[%c0_7, %c0_8] : memref<1x4xf32, #tpu.memory_space<vmem>>, vector<1x4xf32>
    %16 = vector.shape_cast %15 : vector<1x4xf32> to vector<1x4xf32>
    %17 = vector.broadcast %16 : vector<1x4xf32> to vector<64x4xf32>
    %c0_9 = arith.constant 0 : index
    %c0_10 = arith.constant 0 : index
    %18 = vector.load %arg4[%c0_9, %c0_10] : memref<16x4xf32, #tpu.memory_space<vmem>>, vector<16x4xf32>
    %cst = arith.constant dense<0.000000e+00> : vector<64x4xf32>
    %19 = tpu.matmul %8, %18, %cst {dimension_numbers = #tpu.dot_dimension_numbers<[1], [0], [0], [1], [0, 0, 1, 1], [], []>} : vector<64x16xf32>, vector<16x4xf32>, vector<64x4xf32> -> vector<64x4xf32>
    %20 = arith.addf %17, %19 : vector<64x4xf32>
    %c0_11 = arith.constant 0 : index
    %c0_12 = arith.constant 0 : index
    %21 = vector.load %arg5[%c0_11, %c0_12] : memref<8x4xf32, #tpu.memory_space<vmem>>, vector<8x4xf32>
    %cst_13 = arith.constant dense<0.000000e+00> : vector<64x4xf32>
    %22 = tpu.matmul %10, %21, %cst_13 {dimension_numbers = #tpu.dot_dimension_numbers<[1], [0], [0], [1], [0, 0, 1, 1], [], []>} : vector<64x8xf32>, vector<8x4xf32>, vector<64x4xf32> -> vector<64x4xf32>
    %23 = arith.addf %20, %22 : vector<64x4xf32>
    %c0_14 = arith.constant 0 : index
    %c0_15 = arith.constant 0 : index
    %24 = vector.load %arg6[%c0_14, %c0_15] : memref<8x4xf32, #tpu.memory_space<vmem>>, vector<8x4xf32>
    %cst_16 = arith.constant dense<0.000000e+00> : vector<64x4xf32>
    %25 = tpu.matmul %12, %24, %cst_16 {dimension_numbers = #tpu.dot_dimension_numbers<[1], [0], [0], [1], [0, 0, 1, 1], [], []>} : vector<64x8xf32>, vector<8x4xf32>, vector<64x4xf32> -> vector<64x4xf32>
    %26 = arith.addf %23, %25 : vector<64x4xf32>
    %c0_17 = arith.constant 0 : index
    %c0_18 = arith.constant 0 : index
    %27 = vector.load %arg7[%c0_17, %c0_18] : memref<4x4xf32, #tpu.memory_space<vmem>>, vector<4x4xf32>
    %cst_19 = arith.constant dense<0.000000e+00> : vector<64x4xf32>
    %28 = tpu.matmul %14, %27, %cst_19 {dimension_numbers = #tpu.dot_dimension_numbers<[1], [0], [0], [1], [0, 0, 1, 1], [], []>} : vector<64x4xf32>, vector<4x4xf32>, vector<64x4xf32> -> vector<64x4xf32>
    %29 = arith.addf %26, %28 : vector<64x4xf32>
    %30 = vector.shape_cast %29 : vector<64x4xf32> to vector<8x8x4xf32>
    %c0_20 = arith.constant 0 : index
    %c0_21 = arith.constant 0 : index
    %c0_22 = arith.constant 0 : index
    %c0_23 = arith.constant 0 : index
    %31 = vector.load %arg9[%c0_20, %c0_21, %c0_22, %c0_23] : memref<1x8x8x4xf32, #tpu.memory_space<vmem>>, vector<1x8x8x4xf32>
    %32 = vector.shape_cast %31 : vector<1x8x8x4xf32> to vector<8x8x4xf32>
    %33 = vector.shape_cast %30 : vector<8x8x4xf32> to vector<1x8x8x4xf32>
    tpu.vector_store %arg9[%c0_20, %c0_21, %c0_22, %c0_23], %33 {strides = array<i32>} : memref<1x8x8x4xf32, #tpu.memory_space<vmem>>, vector<1x8x8x4xf32>,
    return
  }
  func.func @transform_0(%arg0: i32, %arg1: i32) -> (i32, i32, i32, i32) {
    %c0_i32 = arith.constant 0 : i32
    %c0_i32_0 = arith.constant 0 : i32
    %c0_i32_1 = arith.constant 0 : i32
    return %arg0, %arg1, %c0_i32, %c0_i32_0 : i32, i32, i32, i32
  }
  func.func @transform_1(%arg0: i32, %arg1: i32) -> (i32, i32, i32, i32) {
    %c1_i32 = arith.constant 1 : i32
    %0 = arith.addi %arg1, %c1_i32 : i32
    %c8_i32 = arith.constant 8 : i32
    %1 = arith.muli %0, %c8_i32 : i32
    %c0_i32 = arith.constant 0 : i32
    %c0_i32_0 = arith.constant 0 : i32
    %c0_i32_1 = arith.constant 0 : i32
    return %arg0, %1, %c0_i32, %c0_i32_0 : i32, i32, i32, i32
  }
  func.func @transform_2(%arg0: i32, %arg1: i32) -> (i32, i32) {
    %c0_i32 = arith.constant 0 : i32
    %c0_i32_0 = arith.constant 0 : i32
    %c0_i32_1 = arith.constant 0 : i32
    return %c0_i32, %c0_i32_0 : i32, i32
  }
  func.func @transform_3(%arg0: i32, %arg1: i32) -> (i32, i32) {
    %c0_i32 = arith.constant 0 : i32
    %c0_i32_0 = arith.constant 0 : i32
    %c0_i32_1 = arith.constant 0 : i32
    return %c0_i32, %c0_i32_0 : i32, i32
  }
  func.func @transform_4(%arg0: i32, %arg1: i32) -> (i32, i32) {
    %c0_i32 = arith.constant 0 : i32
    %c0_i32_0 = arith.constant 0 : i32
    %c0_i32_1 = arith.constant 0 : i32
    return %c0_i32, %c0_i32_0 : i32, i32
  }
  func.func @transform_5(%arg0: i32, %arg1: i32) -> (i32, i32) {
    %c0_i32 = arith.constant 0 : i32
    %c0_i32_0 = arith.constant 0 : i32
    %c0_i32_1 = arith.constant 0 : i32
    return %c0_i32, %c0_i32_0 : i32, i32
  }
  func.func @transform_6(%arg0: i32, %arg1: i32) -> (i32, i32) {
    %c0_i32 = arith.constant 0 : i32
    %c0_i32_0 = arith.constant 0 : i32
    %c0_i32_1 = arith.constant 0 : i32
    return %c0_i32, %c0_i32_0 : i32, i32
  }
  func.func @transform_7(%arg0: i32, %arg1: i32) -> (i32, i32, i32, i32) {
    %c0_i32 = arith.constant 0 : i32
    %c0_i32_0 = arith.constant 0 : i32
    %c0_i32_1 = arith.constant 0 : i32
    return %arg0, %arg1, %c0_i32, %c0_i32_0 : i32, i32, i32, i32
  }
}

</mosaic_0001>

<bundles_post_ra>
// kernel: downsample.1
= control target key start
LH: loop header
LB: loop body
LE: loop exit
PB: predicated region body
PF: predicated region fallthrough
CT: control target
= control target key end

     0   :  { %s1416_s24 = smov 0   ;;  %s1418_s25 = smov 0   ;;  %s1567_s0 = inlined_call_operand.vmem [shape: f32[2,9,9,16], index: 0, kind: input, shape index: {}, may-alias: {0,1}]   ;;  %s1568_s1 = inlined_call_operand.vmem [shape: f32[2,9,9,16], index: 1, kind: input, shape index: {}, may-alias: {0,1}]   ;;  %s1569_s2 = inlined_call_operand.vmem [shape: f32[16,4], index: 2, kind: input, shape index: {}]   ;;  %s1570_s3 = inlined_call_operand.vmem [shape: f32[8,4], index: 3, kind: input, shape index: {}]   ;;  %s1571_s4 = inlined_call_operand.vmem [shape: f32[8,4], index: 4, kind: input, shape index: {}]   ;;  %s1572_s5 = inlined_call_operand.vmem [shape: f32[4,4], index: 5, kind: input, shape index: {}]   ;;  %s1573_s6 = inlined_call_operand.vmem [shape: f32[1,4], index: 6, kind: input, shape index: {}]   ;;  %s1574_s7 = inlined_call_operand.vmem [shape: f32[2,8,8,4], index: 7, kind: output, shape index: {}]  }
   0x1   :  { %s1420_s26 = smov 0  }
   0x2 LB: > { %s29_s27 = sadd.s32 1, %s1369_s25  ;;  %p1148_p0 = scmp.ge.s32.totalorder %s1373_s26, 1  ;;  %s1373_s26 = sphi %s1420_s26, %s17_s26   ;;  %s1369_s25 = sphi %s1418_s25, %s1576_s25   ;;  %s1365_s24 = sphi %s1416_s24, %s1575_s24  }
   0x3   : > { %p31_p1 = scmp.ge.s32.totalorder %s29_s27, 2  ;;  %p293_p2 = scmp.lt.s32.totalorder %s1373_s26, 3 }
   0x5   : > { %s1578_s27 = smov (%p31_p1, %s29_s27), 0  ;;  %p294_p3 = pnand %p1148_p0, %p293_p2 }
   0x6   : > { %p356_p4 = scmp.lt.s32.totalorder (!%p294_p3), %s1365_s24, 1  ;;  %v465_v0 = vld [vmem:[%s1569_s2] sm:$0xff] (!%p294_p3)  ;;  %v466_v1 = vld [vmem:[%s1569_s2 + $0x8] sm:$0xff] (!%p294_p3)  ;;  %vm908_vm0 = vcmask (!%p294_p3), 1043456   ;;  %s1375_s19 = smov (!%p294_p3), 124   ;;  %vm467_vm1 = vcmask (!%p294_p3), 130048  }
   0x7   : > { %297 = sbr.rel (%p294_p3) target bundleno = 382 (0x17e), region = 48  ;;  %v1287_v2 = vpack.c.bf16 (!%p294_p3), %v466_v1, %v465_v0  ;;  %v728_v3 = vld [vmem:[%s1571_s4] sm:$0xff] (!%p294_p3)  ;;  %vm428_vm2 = vcmask (!%p294_p3), 1046528   ;;  %vm598_vm3 = vcmask (!%p294_p3), 64512   ;;  %vm891_vm4 = vcmask (!%p294_p3), 31744  }
   0x8   : > { %v1446_v4 = vld [vmem:[%s1572_s5] sm:$0xf] (!%p294_p3)  ;;  %1259 = vmatprep.subr.mxu0 (!%p294_p3), %v728_v3 }
   0x9   : > { %v597_v5 = vld [vmem:[%s1570_s3] sm:$0xff] (!%p294_p3)  ;;  %1288 = vmatprep.subr.bf16.mxu1 (!%p294_p3), %v1287_v2  ;;  %1260 = vmatpush3.msra.mxu0 (!%p294_p3), %v728_v3 }
   0xa   : > { %1290 = vmatpush3.bf16.msra.mxu1 (!%p294_p3), %v1287_v2  ;;  %1273 = vmatprep.subr.msk.mxu0 (!%p294_p3), %vm908_vm0, %v1446_v4 }
   0xb   : > { %1245 = vmatprep.subr.mxu1 (!%p294_p3), %v597_v5 }
   0xe   : > { %s1580_s24 = smov (!%p356_p4, %s1365_s24), 1 }
   0xf   : > { %s1323_s15 = smul.u32 144, %s1580_s24  ;;  %s1191_s30 = sshll.u32 %s1580_s24, 6 }
  0x10   : > { %s392_s10 = scalar_lea.vmem %s1574_s7, %s1191_s30 }
  0x11   : > { %s1459_s18 = scalar_lea.vmem %s1567_s0, %s1323_s15  ;;  %s1190_s20 = sadd.s32 128, %s1323_s15 }
  0x12   : > { %v396_v6 = vld [vmem:[%s1459_s18 + $0x10] sm:$0xff]  ;;  %v398_v8 = vld [vmem:[%s1459_s18 + $0x20] sm:$0xff]  ;;  %s1477_s23 = scalar_lea.vmem %s1568_s1, %s1190_s20  ;;  %v397_v13 = vld [vmem:[%s1459_s18 + $0x18] sm:$0x1] }
  0x13   : > { %v400_v7 = vld [vmem:[%s1459_s18 + $0x30] sm:$0xff]  ;;  %729 = vrot.lane.b32.xlu0 %v396_v6, %s1375_s19  ;;  %v402_v9 = vld [vmem:[%s1459_s18 + $0x40] sm:$0xff]  ;;  %v399_v14 = vld [vmem:[%s1459_s18 + $0x28] sm:$0x1]  ;;  %v432_v16 = vrot.slane %v396_v6, 1  ;;  %v435_v17 = vrot.slane %v398_v8, 1 }
  0x14   : > { %733 = vrot.lane.b32.xlu1 %v400_v7, %s1375_s19  ;;  %v394_v10 = vld [vmem:[%s1459_s18] sm:$0xff]  ;;  %v404_v11 = vld [vmem:[%s1459_s18 + $0x50] sm:$0xff]  ;;  %v395_v15 = vld [vmem:[%s1459_s18 + $0x8] sm:$0x1]  ;;  %v433_v20 = vrot.slane %v397_v13, 1  ;;  %v436_v21 = vrot.slane %v399_v14, 1 }
  0x15   : > { %1233 = vmatprep.mubr.msk.f32.mxu1 %vm467_vm1, %v394_v10  ;;  %v406_v12 = vld [vmem:[%s1459_s18 + $0x60] sm:$0xff]  ;;  %v408_v18 = vld [vmem:[%s1459_s18 + $0x70] sm:$0xff]  ;;  %v401_v22 = vld [vmem:[%s1459_s18 + $0x38] sm:$0x1]  ;;  %v429_v24 = vrot.slane %v394_v10, 1  ;;  %v430_v25 = vrot.slane %v395_v15, 1 }
  0x16   : > { %1234 = vmatmul.mubr.msk.f32.vlgmr.msra.gmra.mrb[0].mxu1 %vm467_vm1, %v396_v6  ;;  %v410_v19 = vld [vmem:[%s1477_s23] sm:$0xff]  ;;  %v403_v23 = vld [vmem:[%s1459_s18 + $0x48] sm:$0x1]  ;;  %v438_v26 = vrot.slane %v400_v7, 1  ;;  %v441_v27 = vrot.slane %v402_v9, 1  ;;  %v434_v28 = vsel %vm428_vm2, %v432_v16, %v433_v20  ;;  %v437_v29 = vsel %vm428_vm2, %v435_v17, %v436_v21 }
  0x17   : > { %731 = vrot.lane.b32.xlu0 %v398_v8, %s1375_s19  ;;  %1236 = vmatprep.mubr.msk.f32.mxu1 %vm467_vm1, %v398_v8  ;;  %v439_v30 = vrot.slane %v401_v22, 1  ;;  %v442_v31 = vrot.slane %v403_v23, 1  ;;  %v405_v32 = vld [vmem:[%s1459_s18 + $0x58] sm:$0x1]  ;;  %v407_v33 = vld [vmem:[%s1459_s18 + $0x68] sm:$0x1]  ;;  %v431_v34 = vsel %vm428_vm2, %v429_v24, %v430_v25 }
  0x18   : > { %735 = vrot.lane.b32.xlu1 %v402_v9, %s1375_s19  ;;  %1246 = vmatpush3.msra.mxu1 %v597_v5  ;;  %v444_v35 = vrot.slane %v404_v11, 1  ;;  %v447_v36 = vrot.slane %v406_v12, 1  ;;  %v445_v39 = vrot.slane %v405_v32, 1  ;;  %v448_v40 = vrot.slane %v407_v33, 1  ;;  %v411_v41 = vld [vmem:[%s1477_s23 + $0x8] sm:$0x1] }
  0x19   : > { %v440_v37 = vsel %vm428_vm2, %v438_v26, %v439_v30  ;;  %v443_v38 = vsel %vm428_vm2, %v441_v27, %v442_v31  ;;  %v409_v42 = vld [vmem:[%s1459_s18 + $0x78] sm:$0x1]  ;;  %v450_v43 = vrot.slane %v408_v18, 1  ;;  %v455_v44 = vrot.slane %v410_v19, 1 }
  0x1a   : > { %1237 = vmatmul.mubr.msk.f32.gmra.mrb[2].mxu1 %vm467_vm1, %v400_v7  ;;  %v456_v45 = vrot.slane %v411_v41, 1  ;;  %v446_v46 = vsel %vm428_vm2, %v444_v35, %v445_v39  ;;  %v449_v47 = vsel %vm428_vm2, %v447_v36, %v448_v40  ;;  %v451_v48 = vrot.slane %v409_v42, 1 }
  0x1b   : > { %737 = vrot.lane.b32.xlu0 %v404_v11, %s1375_s19  ;;  %1239 = vmatprep.mubr.msk.f32.mxu1 %vm467_vm1, %v402_v9 }
  0x1c   : > { %739 = vrot.lane.b32.xlu1 %v406_v12, %s1375_s19  ;;  %v452_v49 = vsel %vm428_vm2, %v450_v43, %v451_v48  ;;  %v457_v50 = vsel %vm428_vm2, %v455_v44, %v456_v45 }
  0x1e   : > { %1240 = vmatmul.mubr.msk.f32.gmra.mrb[4].mxu1 %vm467_vm1, %v404_v11  ;;  %v1153_v11 = vld [vmem:[%s1573_s6] ss:$0 sm:$0xff] }
  0x1f   : > { %741 = vrot.lane.b32.xlu0 %v408_v18, %s1375_s19  ;;  %1242 = vmatprep.mubr.msk.f32.mxu1 %vm467_vm1, %v406_v12 }
  0x20   : > { %743 = vrot.lane.b32.xlu1 %v410_v19, %s1375_s19 }
  0x22   : > { %1243 = vmatmul.mubr.msk.f32.gmra.mrb[6].mxu1 %vm467_vm1, %v408_v18 }
  0x23   : > { %875 = vrot.lane.b32.xlu0 %v434_v28, %s1375_s19  ;;  %1247 = vmatprep.mubr.msk.f32.mxu1 %vm598_vm3, %v431_v34 }
  0x24   : > { %877 = vrot.lane.b32.xlu1 %v437_v29, %s1375_s19 }
  0x26   : > { %1248 = vmatmul.mubr.msk.f32.vlgmr.msra.gmra.mrb[0].mxu1 %vm598_vm3, %v434_v28 }
  0x27   : > { %879 = vrot.lane.b32.xlu0 %v440_v37, %s1375_s19  ;;  %1250 = vmatprep.mubr.msk.f32.mxu1 %vm598_vm3, %v437_v29 }
  0x28   : > { %881 = vrot.lane.b32.xlu1 %v443_v38, %s1375_s19 }
  0x2a   : > { %1251 = vmatmul.mubr.msk.f32.gmra.mrb[2].mxu1 %vm598_vm3, %v440_v37 }
  0x2b   : > { %883 = vrot.lane.b32.xlu0 %v446_v46, %s1375_s19  ;;  %1253 = vmatprep.mubr.msk.f32.mxu1 %vm598_vm3, %v443_v38 }
  0x2c   : > { %885 = vrot.lane.b32.xlu1 %v449_v47, %s1375_s19 }
  0x2e   : > { %1254 = vmatmul.mubr.msk.f32.gmra.mrb[4].mxu1 %vm598_vm3, %v446_v46 }
  0x2f   : > { %887 = vrot.lane.b32.xlu0 %v452_v49, %s1375_s19  ;;  %1256 = vmatprep.mubr.msk.f32.mxu1 %vm598_vm3, %v449_v47 }
  0x30   : > { %889 = vrot.lane.b32.xlu1 %v457_v50, %s1375_s19 }
  0x32   : > { %1257 = vmatmul.mubr.msk.f32.gmra.mrb[6].mxu1 %vm598_vm3, %v452_v49 }
  0x85   : > { %v730_v51 = vpop.permute.xlu0 %729 }
  0x86   : > { %v734_v52 = vpop.permute.xlu1 %733  ;;  %1261 = vmatprep.mubr.msk.f32.mxu0 %vm598_vm3, %v730_v51 }
  0x89   : > { %v732_v53 = vpop.permute.xlu0 %731 }
  0x8a   : > { %v736_v54 = vpop.permute.xlu1 %735  ;;  %1262 = vmatmul.mubr.msk.f32.vlgmr.msra.gmra.mrb[0].mxu0 %vm598_vm3, %v732_v53 }
  0x8b   : > { %1274 = vmatpush3.msk.msra.mxu0 %vm908_vm0, %v1446_v4  ;;  %1264 = vmatprep.mubr.msk.f32.mxu0 %vm598_vm3, %v734_v52 }
  0x8d   : > { %v738_v55 = vpop.permute.xlu0 %737 }
  0x8e   : > { %v740_v56 = vpop.permute.xlu1 %739  ;;  %1265 = vmatmul.mubr.msk.f32.gmra.mrb[2].mxu0 %vm598_vm3, %v736_v54 }
  0x8f   : > { %1267 = vmatprep.mubr.msk.f32.mxu0 %vm598_vm3, %v738_v55 }
  0x91   : > { %v742_v57 = vpop.permute.xlu0 %741 }
  0x92   : > { %v744_v58 = vpop.permute.xlu1 %743  ;;  %1268 = vmatmul.mubr.msk.f32.gmra.mrb[4].mxu0 %vm598_vm3, %v740_v56 }
  0x93   : > { %1270 = vmatprep.mubr.msk.f32.mxu0 %vm598_vm3, %v742_v57 }
  0x95   : > { %v876_v59 = vpop.permute.xlu0 %875 }
  0x96   : > { %v878_v60 = vpop.permute.xlu1 %877  ;;  %1271 = vmatmul.mubr.msk.f32.gmra.mrb[6].mxu0 %vm598_vm3, %v744_v58 }
  0x97   : > { %1275 = vmatprep.mubr.msk.f32.mxu0 %vm891_vm4, %v876_v59 }
  0x99   : > { %v880_v61 = vpop.permute.xlu0 %879 }
  0x9a   : > { %v882_v62 = vpop.permute.xlu1 %881  ;;  %1276 = vmatmul.mubr.msk.f32.vlgmr.msra.gmra.mrb[0].mxu0 %vm891_vm4, %v878_v60 }
  0x9b   : > { %1278 = vmatprep.mubr.msk.f32.mxu0 %vm891_vm4, %v880_v61 }
  0x9d   : > { %v884_v63 = vpop.permute.xlu0 %883 }
  0x9e   : > { %v886_v0 = vpop.permute.xlu1 %885  ;;  %1279 = vmatmul.mubr.msk.f32.gmra.mrb[2].mxu0 %vm891_vm4, %v882_v62 }
  0x9f   : > { %1281 = vmatprep.mubr.msk.f32.mxu0 %vm891_vm4, %v884_v63 }
  0xa1   : > { %v888_v1 = vpop.permute.xlu0 %887 }
  0xa2   : > { %1282 = vmatmul.mubr.msk.f32.gmra.mrb[4].mxu0 %vm891_vm4, %v886_v0  ;;  %v890_v2 = vpop.permute.xlu1 %889 }
  0xa3   : > { %1284 = vmatprep.mubr.msk.f32.mxu0 %vm891_vm4, %v888_v1 }
  0xa6   : > { %1285 = vmatmul.mubr.msk.f32.gmra.mrb[6].mxu0 %vm891_vm4, %v890_v2 }
  0xf9   : > { %v1249_v3 = vpop.f32.mrb[0].mxu1 }
  0xfa   : > { %v681_v4 = vpop.f32.mrb[1].mxu1  ;;  %v1291_v12 = vadd.f32 %v1249_v3, %v1153_v11 }
  0xfb   : > { %v1293_v13 = vadd.f32 %v1153_v11, %v681_v4 }
  0xfd   : > { %v1252_v5 = vpop.f32.mrb[2].mxu1 }
  0xfe   : > { %v691_v6 = vpop.f32.mrb[3].mxu1  ;;  %v1295_v18 = vadd.f32 %v1252_v5, %v1153_v11 }
  0xff   : > { %v1297_v19 = vadd.f32 %v1153_v11, %v691_v6 }
 0x101   : > { %v1255_v7 = vpop.f32.mrb[4].mxu1 }
 0x102   : > { %v701_v8 = vpop.f32.mrb[5].mxu1  ;;  %v1299_v24 = vadd.f32 %v1255_v7, %v1153_v11 }
 0x103   : > { %v1301_v25 = vadd.f32 %v1153_v11, %v701_v8 }
 0x105   : > { %v1258_v9 = vpop.f32.mrb[6].mxu1 }
 0x106   : > { %v711_v10 = vpop.f32.mrb[7].mxu1  ;;  %v1303_v30 = vadd.f32 %v1258_v9, %v1153_v11 }
 0x107   : > { %v1305_v31 = vadd.f32 %v1153_v11, %v711_v10 }
 0x16d   : > { %v1277_v14 = vpop.f32.mrb[0].mxu0 }
 0x16e   : > { %v1292_v15 = vadd.f32 %v1291_v12, %v1277_v14  ;;  %v978_v16 = vpop.f32.mrb[1].mxu0 }
 0x16f   : > { %v1294_v17 = vadd.f32 %v1293_v13, %v978_v16 }
 0x170   : > { %1026 = vst.msk [vmem:[%s392_s10 + $0x8] sm:$0xff] %vm891_vm4, %v1292_v15 }
 0x171   : > { %1025 = vst.msk [vmem:[%s392_s10] sm:$0xff] %vm891_vm4, %v1294_v17  ;;  %v1280_v20 = vpop.f32.mrb[2].mxu0 }
 0x172   : > { %v1296_v21 = vadd.f32 %v1295_v18, %v1280_v20  ;;  %v988_v22 = vpop.f32.mrb[3].mxu0 }
 0x173   : > { %v1298_v23 = vadd.f32 %v1297_v19, %v988_v22 }
 0x174   : > { %1028 = vst.msk [vmem:[%s392_s10 + $0x18] sm:$0xff] %vm891_vm4, %v1296_v21 }
 0x175   : > { %1027 = vst.msk [vmem:[%s392_s10 + $0x10] sm:$0xff] %vm891_vm4, %v1298_v23  ;;  %v1283_v26 = vpop.f32.mrb[4].mxu0 }
 0x176   : > { %v1300_v27 = vadd.f32 %v1299_v24, %v1283_v26  ;;  %v998_v28 = vpop.f32.mrb[5].mxu0 }
 0x177   : > { %v1302_v29 = vadd.f32 %v1301_v25, %v998_v28 }
 0x178   : > { %1030 = vst.msk [vmem:[%s392_s10 + $0x28] sm:$0xff] %vm891_vm4, %v1300_v27 }
 0x179   : > { %1029 = vst.msk [vmem:[%s392_s10 + $0x20] sm:$0xff] %vm891_vm4, %v1302_v29  ;;  %v1286_v32 = vpop.f32.mrb[6].mxu0 }
 0x17a   : > { %v1304_v33 = vadd.f32 %v1303_v30, %v1286_v32  ;;  %v1008_v34 = vpop.f32.mrb[7].mxu0 }
 0x17b   : > { %v1306_v35 = vadd.f32 %v1305_v31, %v1008_v34 }
 0x17c   : > { %1032 = vst.msk [vmem:[%s392_s10 + $0x38] sm:$0xff] %vm891_vm4, %v1304_v33 }
 0x17d   : > { %1031 = vst.msk [vmem:[%s392_s10 + $0x30] sm:$0xff] %vm891_vm4, %v1306_v35 }
 0x17e PF: > { %s17_s26 = sadd.s32 1, %s1373_s26   ;;  %s1575_s24 = smov %s1369_s25 }
 0x17f   : > { %p14_p5 = scmp.ge.s32.totalorder %s17_s26, 4   ;;  %s1576_s25 = smov %s1578_s27 }
 0x181   :  { %16 = sbr.rel (!%p14_p5) target bundleno = 2 (0x2), region = 81 }

</bundles_post_ra>
